<compile_context>
chip_gen: v7x
topology: tpu7x:2x2x1
jax: 0.10.0
libtpu: 0.0.40
codegen_flags: <defaults>
</compile_context>

<pallas_src>
import functools

import jax
import jax.numpy as jnp
from jax import lax
from jax.experimental import pallas as pl
from jax.experimental.pallas import tpu as pltpu


def cnn_lstm_kernel(x_ref, slab_ref, bfc_ref, out_ref, *,
                    F, C, H, D, r_wc, r_bc, r_wih, r_whh, r_bg, r_wfc):
    # x_ref:    (D*B, F)   channel-last rows, timestep-major (row = d*B + b)
    # slab_ref: (rows,128) packed weights; row offsets are sublane-aligned
    #           statics so every slice below is a one-time, tile-friendly load:
    #             [r_wc : r_wc+F , :C ]  Conv1d(k=1) weight       (F, C)
    #             [r_bc : r_bc+1 , :C ]  Conv1d bias              (1, C)
    #             [r_wih: r_wih+C, :4H]  LSTM W_ih (g cols x2)    (C, 4H)
    #             [r_whh: r_whh+H, :4H]  LSTM W_hh (g cols x2)    (H, 4H)
    #             [r_bg : r_bg+1 , :4H]  bias_ih+bias_hh (g x2)   (1, 4H)
    #             [r_wfc: r_wfc+D, :H ]  per-timestep fc weight   (D, H)
    # bfc_ref:  (1,)       final Linear bias (SMEM scalar)
    # out_ref:  (B, 1)
    DB = x_ref.shape[0]
    B = DB // D
    H4 = 4 * H

    w_cnn = slab_ref[r_wc:r_wc + F, :C]
    b_cnn = slab_ref[r_bc:r_bc + 1, :C]
    w_ih = slab_ref[r_wih:r_wih + C, :H4]
    w_hh = slab_ref[r_whh:r_whh + H, :H4]
    b_g = slab_ref[r_bg:r_bg + 1, :H4]
    w_fc = slab_ref[r_wfc:r_wfc + D, :H]

    # ---------------- hoisted precompute (runs once) ----------------
    # Conv1d with kernel_size=1 == per-(b, t) matmul over channels, then
    # relu(tanh(.)).  One tall (D*B, F) x (F, C) matmul.
    z = jnp.dot(x_ref[...], w_cnn, preferred_element_type=jnp.float32) + b_cnn
    z = jnp.maximum(jnp.tanh(z), 0.0)                         # (D*B, C)

    # LSTM input projection + combined gate bias, hoisted out of the
    # recurrence: one (D*B, C) x (C, 4H) matmul instead of D small ones.
    xp = jnp.dot(z, w_ih, preferred_element_type=jnp.float32) + b_g
    xp = xp.reshape(D, B, H4)            # timestep on the leading axis

    h = jnp.zeros((B, H), jnp.float32)
    c = jnp.zeros((B, H), jnp.float32)
    # fc(flatten(hs)) = sum_t sum_j h[t, j] * w_fc[t, j] + b_fc.
    # Accumulate elementwise products on the VPU; reduce once at the end.
    y_vec = jnp.zeros((B, H), jnp.float32)

    # ---------------- recurrence: fully unrolled ----------------
    # One MXU dot + two EUP pushes per step.  The g-gate pre-activations were
    # pre-scaled by 2 in the wrapper, so a single sigmoid over the whole
    # (B, 4H) gates vreg yields i/f/o directly and g via 2*sigmoid(2x)-1.
    for t in range(D):
        gates = xp[t] + jnp.dot(h, w_hh, preferred_element_type=jnp.float32)
        act = jax.nn.sigmoid(gates)                 # single EUP push, (B, 4H)
        i = act[:, 0 * H:1 * H]
        f = act[:, 1 * H:2 * H]
        g = 2.0 * act[:, 2 * H:3 * H] - 1.0         # == tanh(original g preact)
        o = act[:, 3 * H:4 * H]
        c = f * c + i * g
        h = o * jnp.tanh(c)                         # second EUP push, (B, H)
        y_vec = y_vec + h * w_fc[t:t + 1, :]        # VPU accumulate, no MXU

    out_ref[...] = jnp.sum(y_vec, axis=-1, keepdims=True) + bfc_ref[0]


def cnn_lstm_forward(x_ncl, params):
    """x_ncl: (B, features, days) float32, like the PyTorch NCL Conv1d input."""
    B, F, D = x_ncl.shape
    C = params["w_cnn"].shape[1]
    H = params["w_hh"].shape[0]
    H4 = 4 * H

    # Layout plumbing in the wrapper (not in the kernel):
    # (B, F, D) -> (D, B, F) -> (D*B, F), timestep-major rows, so the in-kernel
    # projection reshapes to (D, B, 4H) with each timestep a leading-axis plane.
    x_dbf = jnp.transpose(x_ncl, (2, 0, 1)).reshape(D * B, F)

    # Fold the x2 scaling of the g-gate columns (PyTorch gate order i,f,g,o)
    # into the weights so the kernel can use tanh(x) = 2*sigmoid(2x) - 1 with a
    # single whole-vreg sigmoid.
    def scale_g(w):
        return jnp.concatenate(
            [w[:, :2 * H], 2.0 * w[:, 2 * H:3 * H], w[:, 3 * H:]], axis=-1)

    w_ih = scale_g(params["w_ih"])
    w_hh = scale_g(params["w_hh"])
    b_g = scale_g(params["b_gates"])

    # Pack all small weight operands into ONE (rows, 128) f32 VMEM slab so the
    # kernel prologue issues one weight DMA instead of six.  Row offsets are
    # rounded to sublane multiples so in-kernel static slices stay tile-aligned.
    def _r8(n):
        return ((n + 7) // 8) * 8

    r_wc = 0
    r_bc = r_wc + _r8(F)
    r_wih = r_bc + _r8(1)
    r_whh = r_wih + _r8(C)
    r_bg = r_whh + _r8(H)
    r_wfc = r_bg + _r8(1)
    rows = r_wfc + _r8(D)

    slab = jnp.zeros((rows, 128), jnp.float32)
    slab = slab.at[r_wc:r_wc + F, :C].set(params["w_cnn"])
    slab = slab.at[r_bc:r_bc + 1, :C].set(params["b_cnn"])
    slab = slab.at[r_wih:r_wih + C, :H4].set(w_ih)
    slab = slab.at[r_whh:r_whh + H, :H4].set(w_hh)
    slab = slab.at[r_bg:r_bg + 1, :H4].set(b_g)
    slab = slab.at[r_wfc:r_wfc + D, :H].set(params["w_fc"])

    b_fc = params["b_fc"].reshape(1)             # scalar -> SMEM

    kernel = functools.partial(
        cnn_lstm_kernel, F=F, C=C, H=H, D=D,
        r_wc=r_wc, r_bc=r_bc, r_wih=r_wih, r_whh=r_whh, r_bg=r_bg, r_wfc=r_wfc)

    vmem = pl.BlockSpec(memory_space=pltpu.MemorySpace.VMEM)
    smem = pl.BlockSpec(memory_space=pltpu.MemorySpace.SMEM)
    return pl.pallas_call(
        kernel,
        out_shape=jax.ShapeDtypeStruct((B, 1), jnp.float32),
        in_specs=[vmem, vmem, smem],
        out_specs=vmem,
    )(x_dbf, slab, b_fc)


def init_params(key, days, features, hidden_size=16, conv_out=32):
    ks = jax.random.split(key, 7)
    H = hidden_size
    return {
        # Conv1d(features -> 32, k=1): stored as (F, 32)
        "w_cnn": jax.random.normal(ks[0], (features, conv_out), jnp.float32) * 0.1,
        "b_cnn": jax.random.normal(ks[1], (1, conv_out), jnp.float32) * 0.1,
        # LSTM: weight_ih (4H, 32) -> (32, 4H); weight_hh (4H, H) -> (H, 4H)
        "w_ih": jax.random.normal(ks[2], (conv_out, 4 * H), jnp.float32) * 0.1,
        "w_hh": jax.random.normal(ks[3], (H, 4 * H), jnp.float32) * 0.1,
        # combined bias_ih + bias_hh
        "b_gates": jax.random.normal(ks[4], (1, 4 * H), jnp.float32) * 0.1,
        # Linear(H*days -> 1): weight (1, D*H) stored as (D, H)
        "w_fc": jax.random.normal(ks[5], (days, H), jnp.float32) * 0.1,
        "b_fc": jax.random.normal(ks[6], (1, 1), jnp.float32) * 0.1,
    }


def reference_forward(x_ncl, params):
    """Pure-JAX reference mirroring the PyTorch module semantics."""
    B, F, D = x_ncl.shape
    H = params["w_hh"].shape[0]
    x = jnp.transpose(x_ncl, (0, 2, 1))                       # (B, D, F)
    z = jnp.maximum(jnp.tanh(x @ params["w_cnn"] + params["b_cnn"]), 0.0)

    def step(carry, xt):
        h, c = carry
        gates = xt @ params["w_ih"] + h @ params["w_hh"] + params["b_gates"]
        i = jax.nn.sigmoid(gates[:, 0 * H:1 * H])
        f = jax.nn.sigmoid(gates[:, 1 * H:2 * H])
        g = jnp.tanh(gates[:, 2 * H:3 * H])
        o = jax.nn.sigmoid(gates[:, 3 * H:4 * H])
        c = f * c + i * g
        h = o * jnp.tanh(c)
        return (h, c), h

    (_, _), hs = lax.scan(step, (jnp.zeros((B, H)), jnp.zeros((B, H))),
                          jnp.transpose(z, (1, 0, 2)))        # (D, B, H)
    flat = jnp.transpose(hs, (1, 0, 2)).reshape(B, D * H)
    return flat @ params["w_fc"].reshape(D * H, 1) + params["b_fc"]


if __name__ == "__main__":
    batch, features, days, hidden = 2, 4, 8, 16
    key = jax.random.PRNGKey(0)
    k_x, k_p = jax.random.split(key)

    x = jax.random.normal(k_x, (batch, features, days), jnp.float32)  # NCL
    params = init_params(k_p, days=days, features=features, hidden_size=hidden)

    out = cnn_lstm_forward(x, params)
    out = jax.block_until_ready(out)

    ref = jax.block_until_ready(reference_forward(x, params))
    assert out.shape == (batch, 1)
    # Slightly looser than 1e-5: the g-gate tanh is computed via
    # 2*sigmoid(2x)-1, which differs from jnp.tanh by a few ULP.
    assert jnp.allclose(out, ref, atol=2e-5, rtol=2e-5), (out, ref)

    print("KERNEL_OK")
</pallas_src>

<mosaic_0001>
module attributes {stable_mosaic.version = 11 : i64} {
  func.func @cnn_lstm_kernel(%arg0: memref<16x4xf32, #tpu.memory_space<vmem>>, %arg1: memref<80x128xf32, #tpu.memory_space<vmem>>, %arg2: memref<1xf32, #tpu.memory_space<smem>>, %arg3: memref<2x1xf32, #tpu.memory_space<vmem>>) attributes {dimension_semantics = [], scalar_prefetch = 0 : i64, scratch_operands = 0 : i64, tpu.core_type = #tpu.core_type<tc>} {
    %c0 = arith.constant 0 : index
    %c0_0 = arith.constant 0 : index
    %0 = vector.load %arg1[%c0, %c0_0] : memref<80x128xf32, #tpu.memory_space<vmem>>, vector<4x32xf32>
    %c8 = arith.constant 8 : index
    %c0_1 = arith.constant 0 : index
    %1 = vector.load %arg1[%c8, %c0_1] : memref<80x128xf32, #tpu.memory_space<vmem>>, vector<1x32xf32>
    %c16 = arith.constant 16 : index
    %c0_2 = arith.constant 0 : index
    %2 = vector.load %arg1[%c16, %c0_2] : memref<80x128xf32, #tpu.memory_space<vmem>>, vector<32x64xf32>
    %c48 = arith.constant 48 : index
    %c0_3 = arith.constant 0 : index
    %3 = vector.load %arg1[%c48, %c0_3] : memref<80x128xf32, #tpu.memory_space<vmem>>, vector<16x64xf32>
    %c64 = arith.constant 64 : index
    %c0_4 = arith.constant 0 : index
    %4 = vector.load %arg1[%c64, %c0_4] : memref<80x128xf32, #tpu.memory_space<vmem>>, vector<1x64xf32>
    %c72 = arith.constant 72 : index
    %c0_5 = arith.constant 0 : index
    %5 = vector.load %arg1[%c72, %c0_5] : memref<80x128xf32, #tpu.memory_space<vmem>>, vector<8x16xf32>
    %c0_6 = arith.constant 0 : index
    %c0_7 = arith.constant 0 : index
    %6 = vector.load %arg0[%c0_6, %c0_7] : memref<16x4xf32, #tpu.memory_space<vmem>>, vector<16x4xf32>
    %cst = arith.constant dense<0.000000e+00> : vector<16x32xf32>
    %7 = tpu.matmul %6, %0, %cst {dimension_numbers = #tpu.dot_dimension_numbers<[1], [0], [0], [1], [0, 0, 1, 1], [], []>} : vector<16x4xf32>, vector<4x32xf32>, vector<16x32xf32> -> vector<16x32xf32>
    %8 = vector.broadcast %1 : vector<1x32xf32> to vector<16x32xf32>
    %9 = arith.addf %7, %8 : vector<16x32xf32>
    %10 = math.tanh %9 : vector<16x32xf32>
    %cst_8 = arith.constant 0.000000e+00 : f32
    %11 = vector.broadcast %cst_8 : f32 to vector<16x32xf32>
    %12 = arith.maximumf %10, %11 : vector<16x32xf32>
    %cst_9 = arith.constant dense<0.000000e+00> : vector<16x64xf32>
    %13 = tpu.matmul %12, %2, %cst_9 {dimension_numbers = #tpu.dot_dimension_numbers<[1], [0], [0], [1], [0, 0, 1, 1], [], []>} : vector<16x32xf32>, vector<32x64xf32>, vector<16x64xf32> -> vector<16x64xf32>
    %14 = vector.broadcast %4 : vector<1x64xf32> to vector<16x64xf32>
    %15 = arith.addf %13, %14 : vector<16x64xf32>
    %16 = vector.shape_cast %15 : vector<16x64xf32> to vector<8x2x64xf32>
    %cst_10 = arith.constant 0.000000e+00 : f32
    %17 = vector.broadcast %cst_10 : f32 to vector<2x16xf32>
    %cst_11 = arith.constant 0.000000e+00 : f32
    %18 = vector.broadcast %cst_11 : f32 to vector<2x16xf32>
    %cst_12 = arith.constant 0.000000e+00 : f32
    %19 = vector.broadcast %cst_12 : f32 to vector<2x16xf32>
    %20 = vector.extract_strided_slice %16 {offsets = [0, 0, 0], sizes = [1, 2, 64], strides = [1, 1, 1]} : vector<8x2x64xf32> to vector<1x2x64xf32>
    %21 = vector.shape_cast %20 : vector<1x2x64xf32> to vector<2x64xf32>
    %cst_13 = arith.constant dense<0.000000e+00> : vector<2x64xf32>
    %22 = tpu.matmul %17, %3, %cst_13 {dimension_numbers = #tpu.dot_dimension_numbers<[1], [0], [0], [1], [0, 0, 1, 1], [], []>} : vector<2x16xf32>, vector<16x64xf32>, vector<2x64xf32> -> vector<2x64xf32>
    %23 = arith.addf %21, %22 : vector<2x64xf32>
    %24 = arith.negf %23 : vector<2x64xf32>
    %25 = math.exp %24 : vector<2x64xf32>
    %cst_14 = arith.constant 1.000000e+00 : f32
    %26 = vector.broadcast %cst_14 : f32 to vector<2x64xf32>
    %27 = arith.addf %26, %25 : vector<2x64xf32>
    %28 = arith.divf %26, %27 : vector<2x64xf32>
    %29 = vector.extract_strided_slice %28 {offsets = [0, 0], sizes = [2, 16], strides = [1, 1]} : vector<2x64xf32> to vector<2x16xf32>
    %30 = vector.extract_strided_slice %28 {offsets = [0, 16], sizes = [2, 16], strides = [1, 1]} : vector<2x64xf32> to vector<2x16xf32>
    %31 = vector.extract_strided_slice %28 {offsets = [0, 32], sizes = [2, 16], strides = [1, 1]} : vector<2x64xf32> to vector<2x16xf32>
    %cst_15 = arith.constant 2.000000e+00 : f32
    %32 = vector.broadcast %cst_15 : f32 to vector<2x16xf32>
    %33 = arith.mulf %32, %31 : vector<2x16xf32>
    %cst_16 = arith.constant 1.000000e+00 : f32
    %34 = vector.broadcast %cst_16 : f32 to vector<2x16xf32>
    %35 = arith.subf %33, %34 : vector<2x16xf32>
    %36 = vector.extract_strided_slice %28 {offsets = [0, 48], sizes = [2, 16], strides = [1, 1]} : vector<2x64xf32> to vector<2x16xf32>
    %37 = arith.mulf %30, %18 : vector<2x16xf32>
    %38 = arith.mulf %29, %35 : vector<2x16xf32>
    %39 = arith.addf %37, %38 : vector<2x16xf32>
    %40 = math.tanh %39 : vector<2x16xf32>
    %41 = arith.mulf %36, %40 : vector<2x16xf32>
    %42 = vector.extract_strided_slice %5 {offsets = [0, 0], sizes = [1, 16], strides = [1, 1]} : vector<8x16xf32> to vector<1x16xf32>
    %43 = vector.broadcast %42 : vector<1x16xf32> to vector<2x16xf32>
    %44 = arith.mulf %41, %43 : vector<2x16xf32>
    %45 = arith.addf %19, %44 : vector<2x16xf32>
    %46 = vector.extract_strided_slice %16 {offsets = [1, 0, 0], sizes = [1, 2, 64], strides = [1, 1, 1]} : vector<8x2x64xf32> to vector<1x2x64xf32>
    %47 = vector.shape_cast %46 : vector<1x2x64xf32> to vector<2x64xf32>
    %cst_17 = arith.constant dense<0.000000e+00> : vector<2x64xf32>
    %48 = tpu.matmul %41, %3, %cst_17 {dimension_numbers = #tpu.dot_dimension_numbers<[1], [0], [0], [1], [0, 0, 1, 1], [], []>} : vector<2x16xf32>, vector<16x64xf32>, vector<2x64xf32> -> vector<2x64xf32>
    %49 = arith.addf %47, %48 : vector<2x64xf32>
    %50 = arith.negf %49 : vector<2x64xf32>
    %51 = math.exp %50 : vector<2x64xf32>
    %cst_18 = arith.constant 1.000000e+00 : f32
    %52 = vector.broadcast %cst_18 : f32 to vector<2x64xf32>
    %53 = arith.addf %52, %51 : vector<2x64xf32>
    %54 = arith.divf %52, %53 : vector<2x64xf32>
    %55 = vector.extract_strided_slice %54 {offsets = [0, 0], sizes = [2, 16], strides = [1, 1]} : vector<2x64xf32> to vector<2x16xf32>
    %56 = vector.extract_strided_slice %54 {offsets = [0, 16], sizes = [2, 16], strides = [1, 1]} : vector<2x64xf32> to vector<2x16xf32>
    %57 = vector.extract_strided_slice %54 {offsets = [0, 32], sizes = [2, 16], strides = [1, 1]} : vector<2x64xf32> to vector<2x16xf32>
    %cst_19 = arith.constant 2.000000e+00 : f32
    %58 = vector.broadcast %cst_19 : f32 to vector<2x16xf32>
    %59 = arith.mulf %58, %57 : vector<2x16xf32>
    %cst_20 = arith.constant 1.000000e+00 : f32
    %60 = vector.broadcast %cst_20 : f32 to vector<2x16xf32>
    %61 = arith.subf %59, %60 : vector<2x16xf32>
    %62 = vector.extract_strided_slice %54 {offsets = [0, 48], sizes = [2, 16], strides = [1, 1]} : vector<2x64xf32> to vector<2x16xf32>
    %63 = arith.mulf %56, %39 : vector<2x16xf32>
    %64 = arith.mulf %55, %61 : vector<2x16xf32>
    %65 = arith.addf %63, %64 : vector<2x16xf32>
    %66 = math.tanh %65 : vector<2x16xf32>
    %67 = arith.mulf %62, %66 : vector<2x16xf32>
    %68 = vector.extract_strided_slice %5 {offsets = [1, 0], sizes = [1, 16], strides = [1, 1]} : vector<8x16xf32> to vector<1x16xf32>
    %69 = vector.broadcast %68 : vector<1x16xf32> to vector<2x16xf32>
    %70 = arith.mulf %67, %69 : vector<2x16xf32>
    %71 = arith.addf %45, %70 : vector<2x16xf32>
    %72 = vector.extract_strided_slice %16 {offsets = [2, 0, 0], sizes = [1, 2, 64], strides = [1, 1, 1]} : vector<8x2x64xf32> to vector<1x2x64xf32>
    %73 = vector.shape_cast %72 : vector<1x2x64xf32> to vector<2x64xf32>
    %cst_21 = arith.constant dense<0.000000e+00> : vector<2x64xf32>
    %74 = tpu.matmul %67, %3, %cst_21 {dimension_numbers = #tpu.dot_dimension_numbers<[1], [0], [0], [1], [0, 0, 1, 1], [], []>} : vector<2x16xf32>, vector<16x64xf32>, vector<2x64xf32> -> vector<2x64xf32>
    %75 = arith.addf %73, %74 : vector<2x64xf32>
    %76 = arith.negf %75 : vector<2x64xf32>
    %77 = math.exp %76 : vector<2x64xf32>
    %cst_22 = arith.constant 1.000000e+00 : f32
    %78 = vector.broadcast %cst_22 : f32 to vector<2x64xf32>
    %79 = arith.addf %78, %77 : vector<2x64xf32>
    %80 = arith.divf %78, %79 : vector<2x64xf32>
    %81 = vector.extract_strided_slice %80 {offsets = [0, 0], sizes = [2, 16], strides = [1, 1]} : vector<2x64xf32> to vector<2x16xf32>
    %82 = vector.extract_strided_slice %80 {offsets = [0, 16], sizes = [2, 16], strides = [1, 1]} : vector<2x64xf32> to vector<2x16xf32>
    %83 = vector.extract_strided_slice %80 {offsets = [0, 32], sizes = [2, 16], strides = [1, 1]} : vector<2x64xf32> to vector<2x16xf32>
    %cst_23 = arith.constant 2.000000e+00 : f32
    %84 = vector.broadcast %cst_23 : f32 to vector<2x16xf32>
    %85 = arith.mulf %84, %83 : vector<2x16xf32>
    %cst_24 = arith.constant 1.000000e+00 : f32
    %86 = vector.broadcast %cst_24 : f32 to vector<2x16xf32>
    %87 = arith.subf %85, %86 : vector<2x16xf32>
    %88 = vector.extract_strided_slice %80 {offsets = [0, 48], sizes = [2, 16], strides = [1, 1]} : vector<2x64xf32> to vector<2x16xf32>
    %89 = arith.mulf %82, %65 : vector<2x16xf32>
    %90 = arith.mulf %81, %87 : vector<2x16xf32>
    %91 = arith.addf %89, %90 : vector<2x16xf32>
    %92 = math.tanh %91 : vector<2x16xf32>
    %93 = arith.mulf %88, %92 : vector<2x16xf32>
    %94 = vector.extract_strided_slice %5 {offsets = [2, 0], sizes = [1, 16], strides = [1, 1]} : vector<8x16xf32> to vector<1x16xf32>
    %95 = vector.broadcast %94 : vector<1x16xf32> to vector<2x16xf32>
    %96 = arith.mulf %93, %95 : vector<2x16xf32>
    %97 = arith.addf %71, %96 : vector<2x16xf32>
    %98 = vector.extract_strided_slice %16 {offsets = [3, 0, 0], sizes = [1, 2, 64], strides = [1, 1, 1]} : vector<8x2x64xf32> to vector<1x2x64xf32>
    %99 = vector.shape_cast %98 : vector<1x2x64xf32> to vector<2x64xf32>
    %cst_25 = arith.constant dense<0.000000e+00> : vector<2x64xf32>
    %100 = tpu.matmul %93, %3, %cst_25 {dimension_numbers = #tpu.dot_dimension_numbers<[1], [0], [0], [1], [0, 0, 1, 1], [], []>} : vector<2x16xf32>, vector<16x64xf32>, vector<2x64xf32> -> vector<2x64xf32>
    %101 = arith.addf %99, %100 : vector<2x64xf32>
    %102 = arith.negf %101 : vector<2x64xf32>
    %103 = math.exp %102 : vector<2x64xf32>
    %cst_26 = arith.constant 1.000000e+00 : f32
    %104 = vector.broadcast %cst_26 : f32 to vector<2x64xf32>
    %105 = arith.addf %104, %103 : vector<2x64xf32>
    %106 = arith.divf %104, %105 : vector<2x64xf32>
    %107 = vector.extract_strided_slice %106 {offsets = [0, 0], sizes = [2, 16], strides = [1, 1]} : vector<2x64xf32> to vector<2x16xf32>
    %108 = vector.extract_strided_slice %106 {offsets = [0, 16], sizes = [2, 16], strides = [1, 1]} : vector<2x64xf32> to vector<2x16xf32>
    %109 = vector.extract_strided_slice %106 {offsets = [0, 32], sizes = [2, 16], strides = [1, 1]} : vector<2x64xf32> to vector<2x16xf32>
    %cst_27 = arith.constant 2.000000e+00 : f32
    %110 = vector.broadcast %cst_27 : f32 to vector<2x16xf32>
    %111 = arith.mulf %110, %109 : vector<2x16xf32>
    %cst_28 = arith.constant 1.000000e+00 : f32
    %112 = vector.broadcast %cst_28 : f32 to vector<2x16xf32>
    %113 = arith.subf %111, %112 : vector<2x16xf32>
    %114 = vector.extract_strided_slice %106 {offsets = [0, 48], sizes = [2, 16], strides = [1, 1]} : vector<2x64xf32> to vector<2x16xf32>
    %115 = arith.mulf %108, %91 : vector<2x16xf32>
    %116 = arith.mulf %107, %113 : vector<2x16xf32>
    %117 = arith.addf %115, %116 : vector<2x16xf32>
    %118 = math.tanh %117 : vector<2x16xf32>
    %119 = arith.mulf %114, %118 : vector<2x16xf32>
    %120 = vector.extract_strided_slice %5 {offsets = [3, 0], sizes = [1, 16], strides = [1, 1]} : vector<8x16xf32> to vector<1x16xf32>
    %121 = vector.broadcast %120 : vector<1x16xf32> to vector<2x16xf32>
    %122 = arith.mulf %119, %121 : vector<2x16xf32>
    %123 = arith.addf %97, %122 : vector<2x16xf32>
    %124 = vector.extract_strided_slice %16 {offsets = [4, 0, 0], sizes = [1, 2, 64], strides = [1, 1, 1]} : vector<8x2x64xf32> to vector<1x2x64xf32>
    %125 = vector.shape_cast %124 : vector<1x2x64xf32> to vector<2x64xf32>
    %cst_29 = arith.constant dense<0.000000e+00> : vector<2x64xf32>
    %126 = tpu.matmul %119, %3, %cst_29 {dimension_numbers = #tpu.dot_dimension_numbers<[1], [0], [0], [1], [0, 0, 1, 1], [], []>} : vector<2x16xf32>, vector<16x64xf32>, vector<2x64xf32> -> vector<2x64xf32>
    %127 = arith.addf %125, %126 : vector<2x64xf32>
    %128 = arith.negf %127 : vector<2x64xf32>
    %129 = math.exp %128 : vector<2x64xf32>
    %cst_30 = arith.constant 1.000000e+00 : f32
    %130 = vector.broadcast %cst_30 : f32 to vector<2x64xf32>
    %131 = arith.addf %130, %129 : vector<2x64xf32>
    %132 = arith.divf %130, %131 : vector<2x64xf32>
    %133 = vector.extract_strided_slice %132 {offsets = [0, 0], sizes = [2, 16], strides = [1, 1]} : vector<2x64xf32> to vector<2x16xf32>
    %134 = vector.extract_strided_slice %132 {offsets = [0, 16], sizes = [2, 16], strides = [1, 1]} : vector<2x64xf32> to vector<2x16xf32>
    %135 = vector.extract_strided_slice %132 {offsets = [0, 32], sizes = [2, 16], strides = [1, 1]} : vector<2x64xf32> to vector<2x16xf32>
    %cst_31 = arith.constant 2.000000e+00 : f32
    %136 = vector.broadcast %cst_31 : f32 to vector<2x16xf32>
    %137 = arith.mulf %136, %135 : vector<2x16xf32>
    %cst_32 = arith.constant 1.000000e+00 : f32
    %138 = vector.broadcast %cst_32 : f32 to vector<2x16xf32>
    %139 = arith.subf %137, %138 : vector<2x16xf32>
    %140 = vector.extract_strided_slice %132 {offsets = [0, 48], sizes = [2, 16], strides = [1, 1]} : vector<2x64xf32> to vector<2x16xf32>
    %141 = arith.mulf %134, %117 : vector<2x16xf32>
    %142 = arith.mulf %133, %139 : vector<2x16xf32>
    %143 = arith.addf %141, %142 : vector<2x16xf32>
    %144 = math.tanh %143 : vector<2x16xf32>
    %145 = arith.mulf %140, %144 : vector<2x16xf32>
    %146 = vector.extract_strided_slice %5 {offsets = [4, 0], sizes = [1, 16], strides = [1, 1]} : vector<8x16xf32> to vector<1x16xf32>
    %147 = vector.broadcast %146 : vector<1x16xf32> to vector<2x16xf32>
    %148 = arith.mulf %145, %147 : vector<2x16xf32>
    %149 = arith.addf %123, %148 : vector<2x16xf32>
    %150 = vector.extract_strided_slice %16 {offsets = [5, 0, 0], sizes = [1, 2, 64], strides = [1, 1, 1]} : vector<8x2x64xf32> to vector<1x2x64xf32>
    %151 = vector.shape_cast %150 : vector<1x2x64xf32> to vector<2x64xf32>
    %cst_33 = arith.constant dense<0.000000e+00> : vector<2x64xf32>
    %152 = tpu.matmul %145, %3, %cst_33 {dimension_numbers = #tpu.dot_dimension_numbers<[1], [0], [0], [1], [0, 0, 1, 1], [], []>} : vector<2x16xf32>, vector<16x64xf32>, vector<2x64xf32> -> vector<2x64xf32>
    %153 = arith.addf %151, %152 : vector<2x64xf32>
    %154 = arith.negf %153 : vector<2x64xf32>
    %155 = math.exp %154 : vector<2x64xf32>
    %cst_34 = arith.constant 1.000000e+00 : f32
    %156 = vector.broadcast %cst_34 : f32 to vector<2x64xf32>
    %157 = arith.addf %156, %155 : vector<2x64xf32>
    %158 = arith.divf %156, %157 : vector<2x64xf32>
    %159 = vector.extract_strided_slice %158 {offsets = [0, 0], sizes = [2, 16], strides = [1, 1]} : vector<2x64xf32> to vector<2x16xf32>
    %160 = vector.extract_strided_slice %158 {offsets = [0, 16], sizes = [2, 16], strides = [1, 1]} : vector<2x64xf32> to vector<2x16xf32>
    %161 = vector.extract_strided_slice %158 {offsets = [0, 32], sizes = [2, 16], strides = [1, 1]} : vector<2x64xf32> to vector<2x16xf32>
    %cst_35 = arith.constant 2.000000e+00 : f32
    %162 = vector.broadcast %cst_35 : f32 to vector<2x16xf32>
    %163 = arith.mulf %162, %161 : vector<2x16xf32>
    %cst_36 = arith.constant 1.000000e+00 : f32
    %164 = vector.broadcast %cst_36 : f32 to vector<2x16xf32>
    %165 = arith.subf %163, %164 : vector<2x16xf32>
    %166 = vector.extract_strided_slice %158 {offsets = [0, 48], sizes = [2, 16], strides = [1, 1]} : vector<2x64xf32> to vector<2x16xf32>
    %167 = arith.mulf %160, %143 : vector<2x16xf32>
    %168 = arith.mulf %159, %165 : vector<2x16xf32>
    %169 = arith.addf %167, %168 : vector<2x16xf32>
    %170 = math.tanh %169 : vector<2x16xf32>
    %171 = arith.mulf %166, %170 : vector<2x16xf32>
    %172 = vector.extract_strided_slice %5 {offsets = [5, 0], sizes = [1, 16], strides = [1, 1]} : vector<8x16xf32> to vector<1x16xf32>
    %173 = vector.broadcast %172 : vector<1x16xf32> to vector<2x16xf32>
    %174 = arith.mulf %171, %173 : vector<2x16xf32>
    %175 = arith.addf %149, %174 : vector<2x16xf32>
    %176 = vector.extract_strided_slice %16 {offsets = [6, 0, 0], sizes = [1, 2, 64], strides = [1, 1, 1]} : vector<8x2x64xf32> to vector<1x2x64xf32>
    %177 = vector.shape_cast %176 : vector<1x2x64xf32> to vector<2x64xf32>
    %cst_37 = arith.constant dense<0.000000e+00> : vector<2x64xf32>
    %178 = tpu.matmul %171, %3, %cst_37 {dimension_numbers = #tpu.dot_dimension_numbers<[1], [0], [0], [1], [0, 0, 1, 1], [], []>} : vector<2x16xf32>, vector<16x64xf32>, vector<2x64xf32> -> vector<2x64xf32>
    %179 = arith.addf %177, %178 : vector<2x64xf32>
    %180 = arith.negf %179 : vector<2x64xf32>
    %181 = math.exp %180 : vector<2x64xf32>
    %cst_38 = arith.constant 1.000000e+00 : f32
    %182 = vector.broadcast %cst_38 : f32 to vector<2x64xf32>
    %183 = arith.addf %182, %181 : vector<2x64xf32>
    %184 = arith.divf %182, %183 : vector<2x64xf32>
    %185 = vector.extract_strided_slice %184 {offsets = [0, 0], sizes = [2, 16], strides = [1, 1]} : vector<2x64xf32> to vector<2x16xf32>
    %186 = vector.extract_strided_slice %184 {offsets = [0, 16], sizes = [2, 16], strides = [1, 1]} : vector<2x64xf32> to vector<2x16xf32>
    %187 = vector.extract_strided_slice %184 {offsets = [0, 32], sizes = [2, 16], strides = [1, 1]} : vector<2x64xf32> to vector<2x16xf32>
    %cst_39 = arith.constant 2.000000e+00 : f32
    %188 = vector.broadcast %cst_39 : f32 to vector<2x16xf32>
    %189 = arith.mulf %188, %187 : vector<2x16xf32>
    %cst_40 = arith.constant 1.000000e+00 : f32
    %190 = vector.broadcast %cst_40 : f32 to vector<2x16xf32>
    %191 = arith.subf %189, %190 : vector<2x16xf32>
    %192 = vector.extract_strided_slice %184 {offsets = [0, 48], sizes = [2, 16], strides = [1, 1]} : vector<2x64xf32> to vector<2x16xf32>
    %193 = arith.mulf %186, %169 : vector<2x16xf32>
    %194 = arith.mulf %185, %191 : vector<2x16xf32>
    %195 = arith.addf %193, %194 : vector<2x16xf32>
    %196 = math.tanh %195 : vector<2x16xf32>
    %197 = arith.mulf %192, %196 : vector<2x16xf32>
    %198 = vector.extract_strided_slice %5 {offsets = [6, 0], sizes = [1, 16], strides = [1, 1]} : vector<8x16xf32> to vector<1x16xf32>
    %199 = vector.broadcast %198 : vector<1x16xf32> to vector<2x16xf32>
    %200 = arith.mulf %197, %199 : vector<2x16xf32>
    %201 = arith.addf %175, %200 : vector<2x16xf32>
    %202 = vector.extract_strided_slice %16 {offsets = [7, 0, 0], sizes = [1, 2, 64], strides = [1, 1, 1]} : vector<8x2x64xf32> to vector<1x2x64xf32>
    %203 = vector.shape_cast %202 : vector<1x2x64xf32> to vector<2x64xf32>
    %cst_41 = arith.constant dense<0.000000e+00> : vector<2x64xf32>
    %204 = tpu.matmul %197, %3, %cst_41 {dimension_numbers = #tpu.dot_dimension_numbers<[1], [0], [0], [1], [0, 0, 1, 1], [], []>} : vector<2x16xf32>, vector<16x64xf32>, vector<2x64xf32> -> vector<2x64xf32>
    %205 = arith.addf %203, %204 : vector<2x64xf32>
    %206 = arith.negf %205 : vector<2x64xf32>
    %207 = math.exp %206 : vector<2x64xf32>
    %cst_42 = arith.constant 1.000000e+00 : f32
    %208 = vector.broadcast %cst_42 : f32 to vector<2x64xf32>
    %209 = arith.addf %208, %207 : vector<2x64xf32>
    %210 = arith.divf %208, %209 : vector<2x64xf32>
    %211 = vector.extract_strided_slice %210 {offsets = [0, 0], sizes = [2, 16], strides = [1, 1]} : vector<2x64xf32> to vector<2x16xf32>
    %212 = vector.extract_strided_slice %210 {offsets = [0, 16], sizes = [2, 16], strides = [1, 1]} : vector<2x64xf32> to vector<2x16xf32>
    %213 = vector.extract_strided_slice %210 {offsets = [0, 32], sizes = [2, 16], strides = [1, 1]} : vector<2x64xf32> to vector<2x16xf32>
    %cst_43 = arith.constant 2.000000e+00 : f32
    %214 = vector.broadcast %cst_43 : f32 to vector<2x16xf32>
    %215 = arith.mulf %214, %213 : vector<2x16xf32>
    %cst_44 = arith.constant 1.000000e+00 : f32
    %216 = vector.broadcast %cst_44 : f32 to vector<2x16xf32>
    %217 = arith.subf %215, %216 : vector<2x16xf32>
    %218 = vector.extract_strided_slice %210 {offsets = [0, 48], sizes = [2, 16], strides = [1, 1]} : vector<2x64xf32> to vector<2x16xf32>
    %219 = arith.mulf %212, %195 : vector<2x16xf32>
    %220 = arith.mulf %211, %217 : vector<2x16xf32>
    %221 = arith.addf %219, %220 : vector<2x16xf32>
    %222 = math.tanh %221 : vector<2x16xf32>
    %223 = arith.mulf %218, %222 : vector<2x16xf32>
    %224 = vector.extract_strided_slice %5 {offsets = [7, 0], sizes = [1, 16], strides = [1, 1]} : vector<8x16xf32> to vector<1x16xf32>
    %225 = vector.broadcast %224 : vector<1x16xf32> to vector<2x16xf32>
    %226 = arith.mulf %223, %225 : vector<2x16xf32>
    %227 = arith.addf %201, %226 : vector<2x16xf32>
    %cst_45 = arith.constant dense<0.000000e+00> : vector<2xf32>
    %228 = vector.multi_reduction <add>, %227, %cst_45 [1] : vector<2x16xf32> to vector<2xf32>
    %229 = vector.shape_cast %228 : vector<2xf32> to vector<2x1xf32>
    %c0_46 = arith.constant 0 : index
    %230 = memref.load %arg2[%c0_46] : memref<1xf32, #tpu.memory_space<smem>>
    %231 = vector.broadcast %230 : f32 to vector<2x1xf32>
    %232 = arith.addf %229, %231 : vector<2x1xf32>
    %c0_47 = arith.constant 0 : index
    %c0_48 = arith.constant 0 : index
    %233 = vector.load %arg3[%c0_47, %c0_48] : memref<2x1xf32, #tpu.memory_space<vmem>>, vector<2x1xf32>
    tpu.vector_store %arg3[%c0_47, %c0_48], %232 {strides = array<i32>} : memref<2x1xf32, #tpu.memory_space<vmem>>, vector<2x1xf32>,
    return
  }
}

</mosaic_0001>

<bundles_post_ra>
// kernel: tpu_custom_call.1
= control target key start
LH: loop header
LB: loop body
LE: loop exit
PB: predicated region body
PF: predicated region fallthrough
CT: control target
= control target key end

     0   :  { %9 = vsyncpa [#allocation4], 0  ;;  %s1537_s12 = smov [#allocation3]   ;;  %s1744_s0 = inlined_call_operand.vmem [shape: f32[16,4], index: 0, kind: input, shape index: {}]   ;;  %s1745_s1 = inlined_call_operand.hbm [shape: f32[80,128], index: 1, kind: input, shape index: {}]   ;;  %s1746_s2 = inlined_call_operand.<no memory space> [shape: f32[1], index: 2, kind: input, shape index: {}]   ;;  %s1747_s3 = inlined_call_operand.vmem [shape: f32[2,1], index: 3, kind: output, shape index: {}]  }
   0x1   :  { %s17_s13 = sshll.u32 %s1537_s12, 4  ;;  %s1513_s16 = scalar_lea.hbm %s1745_s1, 1280  ;;  %s18_s13 = int_to_ptr.vmem [resolvable:$true] %s17_s13 }
   0x2   :  { %p1514_p0 = scmp.ne.s32.totalorder %s1745_s1, %s1513_s16  ;;  %p1517_p1 = scmp.lt.u32.totalorder %s1513_s16, %s1745_s1 }
   0x4   :  { %p1519_p2 = pnand %p1517_p1, %p1514_p0 }
   0x6   :  { %1522 = shalt.err (!%p1519_p2)
}
   0x7   :  { %s1523_s21 = scalar_lea.vmem %s18_s13, 1280  ;;  %p1528_p4 = scmp.lt.s32.totalorder %s18_s13, %s18_s13 }
   0x8   :  { %p1524_p3 = scmp.ne.s32.totalorder %s18_s13, %s1523_s21  ;;  %p1529_p5 = scmp.lt.s32.totalorder %s1523_s21, %s1523_s21 }
   0xa   :  { %p1530_p6 = por %p1529_p5, %p1528_p4 }
   0xc   :  { %p1531_p7 = pnand %p1530_p6, %p1524_p3 }
   0xe   :  { %1534 = shalt.err (!%p1531_p7)
}
   0xf   :  { %s1538_s22 = smov 128   ;;  %s1539_s23 = smov 8  }
  0x10   :  { %23 = dma.hbm_to_vmem [thread:$0]  %s1745_s1, 1280, %s18_s13, [#allocation4], %s1538_s22, %s1538_s22, %s1539_s23  }
  0x11   :  { %1535 = dma.done.wait [#allocation4], 1280  }
  0x12   :  { %1536 = vsyncadd [#allocation4], 4294966016  ;;  %vm52_vm0 = vcmask 1043456   ;;  %vm45_vm1 = vcmask 31744   ;;  %v29_v0 = vld [vmem:[#allocation3] sm:$0xf]  ;;  %v227_v27 = vlaneseq }
  0x13   :  { %v39_v1 = vld [vmem:[%s1744_s0] sm:$0xff]  ;;  %v40_v2 = vld [vmem:[%s1744_s0 + $0x8] sm:$0xff]  ;;  %1345 = vmatprep.subr.msk.mxu0 %vm52_vm0, %v29_v0  ;;  %v31_v3 = vld [vmem:[#allocation3 + $0x10] sm:$0xff]  ;;  %v1540_v12 = vmov 0.0|0.0   ;;  %vm1541_vm2 = vmmov 0   ;;  %v1542_v13 = vmov 0.0  }
  0x14   :  { %1347 = vmatprep.mubr.msk.f32.mxu0 %vm45_vm1, %v39_v1  ;;  %1346 = vmatpush3.msk.msra.mxu0 %vm52_vm0, %v29_v0  ;;  %v32_v4 = vld [vmem:[#allocation3 + $0x18] sm:$0xff]  ;;  %v33_v6 = vld [vmem:[#allocation3 + $0x20] sm:$0xff]  ;;  %v34_v7 = vld [vmem:[#allocation3 + $0x28] sm:$0xff]  ;;  %vm139_vm3 = vcmask 261120   ;;  %v1543_v25 = vmov 1983009808  }
  0x15   :  { %1348 = vmatmul.mubr.msk.f32.vlgmr.msra.gmra.mrb[0].mxu0 %vm45_vm1, %v40_v2  ;;  %v1417_v5 = vpack.c.bf16 %v32_v4, %v31_v3  ;;  %v1421_v8 = vpack.c.bf16 %v34_v7, %v33_v6  ;;  %v35_v9 = vld [vmem:[#allocation3 + $0x30] sm:$0xff]  ;;  %v36_v10 = vld [vmem:[#allocation3 + $0x38] sm:$0xff]  ;;  %1425 = vmatprep.subr.bf16.mxu0 %v1540_v12  ;;  %v1282_v14 = vld [vmem:[#allocation3 + $0x8] ss:$0 sm:$0xff]  ;;  %v225_v26 = vunpack.c.l.s4 %v1543_v25  ;;  %v1604_v29 = vshrl.u32 %v227_v27, 7  ;;  %s1544_s0 = smov 96  }
  0x16   :  { %v1587_v11 = vpack.c.bf16 %v36_v10, %v35_v9  ;;  %1365 = vmatprep.mubr.msk.f32.mxu0 %vm1541_vm2, %v1542_v13  ;;  %v1286_v30 = vld [vmem:[#allocation3 + $0x40] ss:$0 sm:$0xff]  ;;  %s1545_s1 = smov 16   ;;  %s1546_s30 = smov 32   ;;  %vm265_vm4 = vcmask 130048   ;;  %vm1268_vm5 = vcmask 123904  }
  0x17   :  { %1418 = vmatprep.subr.bf16.mxu1 %v1417_v5  ;;  %v226_v28 = vunpack.c.0.s8 %v225_v26  ;;  %s1547_s4 = smov 80   ;;  %s1548_s5 = smov 48   ;;  %vm1275_vm6 = vcmask 1024  }
  0x18   :  { %1420 = vmatpush3.bf16.msra.mxu1 %v1417_v5  ;;  %1427 = vmatpush3.bf16.msra.mxu0 %v1587_v11 }
  0x19   :  { %1422 = vmatprep.subr.bf16.mxu1 %v1421_v8  ;;  %1428 = vmatprep.subr.bf16.mxu0 %v1540_v12  ;;  %v1607_v32 = vsub.s32 %v226_v28, %v1604_v29 }
  0x1b   :  { %1366 = vmatmul.mubr.f32.vlgmr.msra.gmra.mrb[2].mxu0 %v1542_v13 }
  0x1c   :  { %1424 = vmatpush3.bf16.msra.mxu1 %v1421_v8  ;;  %1430 = vmatpush3.bf16.msra.mxu0 %v1587_v11 }
  0x1d   :  { %1431 = vmatprep.subr.bf16.mxu1 %v1540_v12  ;;  %1372 = vmatprep.mubr.msk.f32.mxu0 %vm1541_vm2, %v1542_v13 }
  0x1e   :  { %1434 = vmatprep.subr.bf16.mxu0 %v1540_v12 }
  0xe8   :  { %v1349_v15 = vpop.f32.mrb[0].mxu0 }
  0xe9   :  { %v128_v16 = vadd.f32 %v1349_v15, %v1282_v14  ;;  %v122_v17 = vpop.f32.mrb[1].mxu0 }
  0xea   :  { %v123_v18 = vadd.f32 %v1282_v14, %v122_v17 }
  0xeb   :  { %1461 = vtanh.f32 %v128_v16 }
  0xec   :  { %1463 = vtanh.f32 %v123_v18 }
  0xee   :  { %v335_v23 = vpop.f32.mrb[2].mxu0 }
  0xef   :  { %v1367_v24 = vpop.f32.mrb[3].mxu0 }
  0xf5   :  { %v1462_v19 = vpop.eup %1461 }
  0xf6   :  { %v1464_v20 = vpop.eup %1463  ;;  %v134_v22 = vmax.f32 %v1462_v19, 0.0 }
  0xf7   :  { %v133_v21 = vmax.f32 %v1464_v20, 0.0 }
  0xf9   :  { %1358 = vmatprep.mubr.msk.f32.mxu1 %vm139_vm3, %v133_v21 }
  0xfa   :  { %1359 = vmatmul.mubr.msk.f32.vlgmr.msra.gmra.mrb[0].mxu1 %vm139_vm3, %v134_v22 }
  0xfb   :  { %1433 = vmatpush3.bf16.msra.mxu1 %v1587_v11  ;;  %1379 = vmatprep.mubr.msk.f32.mxu1 %vm1541_vm2, %v1542_v13 }
  0xfc   :  { %1437 = vmatprep.subr.bf16.mxu1 %v1540_v12 }
 0x1cd   :  { %v1360_v31 = vpop.f32.mrb[0].mxu1 }
 0x1ce   :  { %v1609_v33 = vadd.f32 %v1360_v31, %v1286_v30  ;;  %v212_v34 = vpop.f32.mrb[1].mxu1 }
 0x1cf   :  { %v1611_v35 = vadd.f32 %v1286_v30, %v212_v34 }
 0x1d1   :  { %v230_v36 = vrot.slane %v1611_v35, %v1607_v32  ;;  %v223_v10 = vcombine.high %v1611_v35, %v1611_v35 }
 0x1d3   :  { %v339_v37 = vadd.f32 %v335_v23, %v230_v36  ;;  %v238_v54 = vcombine.high %v230_v36, %v230_v36  ;;  %v237_v14 = vrot.slane %v223_v10, %v1607_v32 }
 0x1d5   :  { %v1289_v38 = vmul.f32 -1.442695, %v339_v37  ;;  %v239_v37 = vcombine.high %v237_v14, %v237_v14 }
 0x1d7   :  { %1465 = vpow2.f32 %v1289_v38 }
 0x1e1   :  { %v1466_v39 = vpop.eup %1465 }
 0x1e2   :  { %v343_v40 = vadd.f32 1.0, %v1466_v39 }
 0x1e4   :  { %1467 = vrcp.f32 %v343_v40 }
 0x1ee   :  { %v1468_v41 = vpop.eup %1467 }
 0x1ef   :  { %v346_v42 = vmul.f32 2.0, %v1468_v41  ;;  %v348_v46 = vmul.f32 0.0, %v1468_v41 }
 0x1f1   :  { %v1290_v43 = vadd.f32 -1.0, %v346_v42 }
 0x1f3   :  { %350 = vrot.lane.b32.xlu0 %v1290_v43, %s1544_s0 }
 0x265   :  { %v351_v44 = vpop.permute.xlu0 %350 }
 0x266   :  { %v353_v45 = vmul.f32 %v1468_v41, %v351_v44 }
 0x268   :  { %355 = vrot.lane.b32.xlu0 %v353_v45, %s1545_s1 }
 0x2da   :  { %v356_v47 = vpop.permute.xlu0 %355 }
 0x2db   :  { %v358_v48 = vadd.f32 %v356_v47, %v348_v46 }
 0x2dd   :  { %1469 = vtanh.f32 %v358_v48 }
 0x2e7   :  { %v1470_v49 = vpop.eup %1469 }
 0x2e8   :  { %361 = vrot.lane.b32.xlu1 %v1470_v49, %s1546_s30 }
 0x35a   :  { %v362_v50 = vpop.permute.xlu1 %361 }
 0x35b   :  { %v1618_v51 = vmul.f32 %v1468_v41, %v362_v50 }
 0x35d   :  { %v389_v52 = vrot.slane %v1618_v51, %v1607_v32 }
 0x35f   :  { %390 = vrot.lane.b32.xlu1 %v389_v52, %s1547_s4 }
 0x3d1   :  { %v391_v53 = vpop.permute.xlu1 %390 }
 0x3d2   :  { %1373 = vmatmul.mubr.msk.f32.vlgmr.msra.gmra.mrb[4].mxu0 %vm265_vm4, %v391_v53 }
 0x3d3   :  { %1436 = vmatpush3.bf16.msra.mxu0 %v1587_v11  ;;  %1386 = vmatprep.mubr.msk.f32.mxu0 %vm1541_vm2, %v1542_v13 }
 0x3d4   :  { %1440 = vmatprep.subr.bf16.mxu0 %v1540_v12 }
 0x4a5   :  { %v460_v55 = vpop.f32.mrb[4].mxu0 }
 0x4a6   :  { %v464_v56 = vadd.f32 %v460_v55, %v238_v54  ;;  %v1374_v57 = vpop.f32.mrb[5].mxu0 }
 0x4a7   :  { %v247_v57 = vrot.slane %v1609_v33, %v1607_v32 }
 0x4a8   :  { %v1292_v58 = vmul.f32 -1.442695, %v464_v56 }
 0x4aa   :  { %1471 = vpow2.f32 %v1292_v58 }
 0x4b4   :  { %v1472_v59 = vpop.eup %1471 }
 0x4b5   :  { %v468_v60 = vadd.f32 1.0, %v1472_v59 }
 0x4b7   :  { %1473 = vrcp.f32 %v468_v60 }
 0x4c1   :  { %v1474_v61 = vpop.eup %1473 }
 0x4c2   :  { %v471_v62 = vmul.f32 2.0, %v1474_v61  ;;  %v473_v2 = vmul.f32 %v1474_v61, %v358_v48 }
 0x4c4   :  { %v1293_v63 = vadd.f32 -1.0, %v471_v62 }
 0x4c6   :  { %475 = vrot.lane.b32.xlu0 %v1293_v63, %s1544_s0 }
 0x538   :  { %v476_v0 = vpop.permute.xlu0 %475 }
 0x539   :  { %v478_v1 = vmul.f32 %v1474_v61, %v476_v0 }
 0x53b   :  { %480 = vrot.lane.b32.xlu1 %v478_v1, %s1545_s1 }
 0x5ad   :  { %v481_v3 = vpop.permute.xlu1 %480 }
 0x5ae   :  { %v483_v4 = vadd.f32 %v481_v3, %v473_v2 }
 0x5b0   :  { %1475 = vtanh.f32 %v483_v4 }
 0x5ba   :  { %v1476_v5 = vpop.eup %1475 }
 0x5bb   :  { %486 = vrot.lane.b32.xlu0 %v1476_v5, %s1546_s30 }
 0x62d   :  { %v487_v6 = vpop.permute.xlu0 %486 }
 0x62e   :  { %v1631_v7 = vmul.f32 %v1474_v61, %v487_v6 }
 0x630   :  { %v514_v8 = vrot.slane %v1631_v7, %v1607_v32 }
 0x632   :  { %515 = vrot.lane.b32.xlu1 %v514_v8, %s1547_s4 }
 0x6a4   :  { %v516_v9 = vpop.permute.xlu1 %515 }
 0x6a5   :  { %1380 = vmatmul.mubr.msk.f32.vlgmr.msra.gmra.mrb[2].mxu1 %vm265_vm4, %v516_v9 }
 0x6a6   :  { %1439 = vmatpush3.bf16.msra.mxu1 %v1587_v11  ;;  %1393 = vmatprep.mubr.msk.f32.mxu1 %vm1541_vm2, %v1542_v13 }
 0x6a7   :  { %1443 = vmatprep.subr.bf16.mxu1 %v1540_v12 }
 0x778   :  { %v585_v15 = vpop.f32.mrb[2].mxu1 }
 0x779   :  { %v589_v16 = vadd.f32 %v585_v15, %v237_v14  ;;  %v1381_v17 = vpop.f32.mrb[3].mxu1 }
 0x77a   :  { %v255_v17 = vcombine.high %v247_v57, %v247_v57 }
 0x77b   :  { %v1295_v18 = vmul.f32 -1.442695, %v589_v16 }
 0x77d   :  { %1477 = vpow2.f32 %v1295_v18 }
 0x787   :  { %v1478_v19 = vpop.eup %1477 }
 0x788   :  { %v593_v20 = vadd.f32 1.0, %v1478_v19 }
 0x78a   :  { %1479 = vrcp.f32 %v593_v20 }
 0x794   :  { %v1480_v21 = vpop.eup %1479 }
 0x795   :  { %v596_v22 = vmul.f32 2.0, %v1480_v21  ;;  %v598_v26 = vmul.f32 %v1480_v21, %v483_v4 }
 0x797   :  { %v1296_v23 = vadd.f32 -1.0, %v596_v22 }
 0x799   :  { %600 = vrot.lane.b32.xlu0 %v1296_v23, %s1544_s0 }
 0x80b   :  { %v601_v24 = vpop.permute.xlu0 %600 }
 0x80c   :  { %v603_v25 = vmul.f32 %v1480_v21, %v601_v24 }
 0x80e   :  { %605 = vrot.lane.b32.xlu1 %v603_v25, %s1545_s1 }
 0x880   :  { %v606_v27 = vpop.permute.xlu1 %605 }
 0x881   :  { %v608_v28 = vadd.f32 %v606_v27, %v598_v26 }
 0x883   :  { %1481 = vtanh.f32 %v608_v28 }
 0x88d   :  { %v1482_v30 = vpop.eup %1481 }
 0x88e   :  { %611 = vrot.lane.b32.xlu0 %v1482_v30, %s1546_s30 }
 0x900   :  { %v612_v31 = vpop.permute.xlu0 %611 }
 0x901   :  { %v1647_v34 = vmul.f32 %v1480_v21, %v612_v31 }
 0x903   :  { %v639_v35 = vrot.slane %v1647_v34, %v1607_v32 }
 0x905   :  { %640 = vrot.lane.b32.xlu1 %v639_v35, %s1547_s4 }
 0x977   :  { %v641_v36 = vpop.permute.xlu1 %640 }
 0x978   :  { %1387 = vmatmul.mubr.msk.f32.vlgmr.msra.gmra.mrb[6].mxu0 %vm265_vm4, %v641_v36 }
 0x979   :  { %1442 = vmatpush3.bf16.msra.mxu0 %v1587_v11  ;;  %1400 = vmatprep.mubr.msk.f32.mxu0 %vm1541_vm2, %v1542_v13 }
 0x97a   :  { %1446 = vmatprep.subr.bf16.mxu0 %v1540_v12 }
 0xa4b   :  { %v710_v38 = vpop.f32.mrb[6].mxu0 }
 0xa4c   :  { %v714_v39 = vadd.f32 %v710_v38, %v239_v37  ;;  %v1388_v40 = vpop.f32.mrb[7].mxu0 }
 0xa4e   :  { %v1298_v41 = vmul.f32 -1.442695, %v714_v39  ;;  %v240_v39 = vcombine.high %v1609_v33, %v1609_v33 }
 0xa50   :  { %1483 = vpow2.f32 %v1298_v41  ;;  %v254_v40 = vrot.slane %v240_v39, %v1607_v32 }
 0xa5a   :  { %v1484_v42 = vpop.eup %1483 }
 0xa5b   :  { %v718_v43 = vadd.f32 1.0, %v1484_v42 }
 0xa5d   :  { %1485 = vrcp.f32 %v718_v43 }
 0xa67   :  { %v1486_v44 = vpop.eup %1485 }
 0xa68   :  { %v721_v45 = vmul.f32 2.0, %v1486_v44  ;;  %v723_v49 = vmul.f32 %v1486_v44, %v608_v28 }
 0xa6a   :  { %v1299_v46 = vadd.f32 -1.0, %v721_v45 }
 0xa6c   :  { %725 = vrot.lane.b32.xlu0 %v1299_v46, %s1544_s0 }
 0xade   :  { %v726_v47 = vpop.permute.xlu0 %725 }
 0xadf   :  { %v728_v48 = vmul.f32 %v1486_v44, %v726_v47 }
 0xae1   :  { %730 = vrot.lane.b32.xlu1 %v728_v48, %s1545_s1 }
 0xb53   :  { %v731_v12 = vpop.permute.xlu1 %730 }
 0xb54   :  { %v733_v50 = vadd.f32 %v731_v12, %v723_v49 }
 0xb56   :  { %1487 = vtanh.f32 %v733_v50 }
 0xb60   :  { %v1488_v52 = vpop.eup %1487 }
 0xb61   :  { %736 = vrot.lane.b32.xlu0 %v1488_v52, %s1546_s30 }
 0xbd3   :  { %v737_v53 = vpop.permute.xlu0 %736 }
 0xbd4   :  { %v1660_v54 = vmul.f32 %v1486_v44, %v737_v53 }
 0xbd6   :  { %v764_v55 = vrot.slane %v1660_v54, %v1607_v32 }
 0xbd8   :  { %765 = vrot.lane.b32.xlu1 %v764_v55, %s1547_s4 }
 0xc4a   :  { %v766_v56 = vpop.permute.xlu1 %765 }
 0xc4b   :  { %1394 = vmatmul.mubr.msk.f32.vlgmr.msra.gmra.mrb[4].mxu1 %vm265_vm4, %v766_v56 }
 0xc4c   :  { %1445 = vmatpush3.bf16.msra.mxu1 %v1587_v11  ;;  %1407 = vmatprep.mubr.msk.f32.mxu1 %vm1541_vm2, %v1542_v13 }
 0xd1e   :  { %v835_v58 = vpop.f32.mrb[4].mxu1 }
 0xd1f   :  { %v839_v59 = vadd.f32 %v835_v58, %v247_v57  ;;  %v1395_v60 = vpop.f32.mrb[5].mxu1 }
 0xd20   :  { %v256_v60 = vcombine.high %v254_v40, %v254_v40 }
 0xd21   :  { %v1301_v61 = vmul.f32 -1.442695, %v839_v59 }
 0xd23   :  { %1489 = vpow2.f32 %v1301_v61 }
 0xd2d   :  { %v1490_v62 = vpop.eup %1489 }
 0xd2e   :  { %v843_v63 = vadd.f32 1.0, %v1490_v62 }
 0xd30   :  { %1491 = vrcp.f32 %v843_v63 }
 0xd3a   :  { %v1492_v0 = vpop.eup %1491 }
 0xd3b   :  { %v846_v1 = vmul.f32 2.0, %v1492_v0  ;;  %v848_v5 = vmul.f32 %v1492_v0, %v733_v50 }
 0xd3d   :  { %v1302_v2 = vadd.f32 -1.0, %v846_v1 }
 0xd3f   :  { %850 = vrot.lane.b32.xlu0 %v1302_v2, %s1544_s0 }
 0xdb1   :  { %v851_v3 = vpop.permute.xlu0 %850 }
 0xdb2   :  { %v853_v4 = vmul.f32 %v1492_v0, %v851_v3  ;;  %v367_v3 = vsub.s32 0, %v1604_v29 }
 0xdb4   :  { %855 = vrot.lane.b32.xlu1 %v853_v4, %s1545_s1  ;;  %v38_v4 = vld [vmem:[#allocation3 + $0x48] sm:$0xff] }
 0xe26   :  { %v856_v6 = vpop.permute.xlu1 %855 }
 0xe27   :  { %v858_v8 = vadd.f32 %v856_v6, %v848_v5 }
 0xe29   :  { %1493 = vtanh.f32 %v858_v8 }
 0xe33   :  { %v1494_v9 = vpop.eup %1493 }
 0xe34   :  { %861 = vrot.lane.b32.xlu0 %v1494_v9, %s1546_s30  ;;  %v617_v9 = vsub.s32 2, %v1604_v29 }
 0xea6   :  { %v862_v10 = vpop.permute.xlu0 %861 }
 0xea7   :  { %v1674_v14 = vmul.f32 %v1492_v0, %v862_v10 }
 0xea9   :  { %v889_v15 = vrot.slane %v1674_v14, %v1607_v32 }
 0xeab   :  { %890 = vrot.lane.b32.xlu1 %v889_v15, %s1547_s4 }
 0xf1d   :  { %v891_v16 = vpop.permute.xlu1 %890 }
 0xf1e   :  { %1401 = vmatmul.mubr.msk.f32.vlgmr.msra.gmra.mrb[8].mxu0 %vm265_vm4, %v891_v16  ;;  %v618_v16 = vrot.slane %v38_v4, %v617_v9 }
 0xf1f   :  { %1448 = vmatpush3.bf16.msra.mxu0 %v1587_v11  ;;  %1414 = vmatprep.mubr.msk.f32.mxu0 %vm1541_vm2, %v1542_v13 }
 0xff1   :  { %v960_v18 = vpop.f32.mrb[8].mxu0 }
 0xff2   :  { %v964_v19 = vadd.f32 %v960_v18, %v255_v17  ;;  %v1402_v20 = vpop.f32.mrb[9].mxu0  ;;  %v867_v17 = vsub.s32 4, %v1604_v29  ;;  %v626_v18 = vrot.slane %v618_v16, %v1607_v32 }
 0xff3   :  { %v1117_v20 = vsub.s32 6, %v1604_v29 }
 0xff4   :  { %v1304_v21 = vmul.f32 -1.442695, %v964_v19  ;;  %v868_v19 = vrot.slane %v38_v4, %v867_v17 }
 0xff6   :  { %1495 = vpow2.f32 %v1304_v21  ;;  %v876_v21 = vrot.slane %v868_v19, %v1607_v32 }
0x1000   :  { %v1496_v22 = vpop.eup %1495 }
0x1001   :  { %v968_v23 = vadd.f32 1.0, %v1496_v22  ;;  %v1118_v22 = vrot.slane %v38_v4, %v1117_v20 }
0x1003   :  { %1497 = vrcp.f32 %v968_v23  ;;  %v1126_v23 = vrot.slane %v1118_v22, %v1607_v32 }
0x100d   :  { %v1498_v24 = vpop.eup %1497 }
0x100e   :  { %v971_v25 = vmul.f32 2.0, %v1498_v24  ;;  %v973_v11 = vmul.f32 %v1498_v24, %v858_v8  ;;  %v368_v8 = vrot.slane %v38_v4, %v367_v3 }
0x1010   :  { %v1305_v26 = vadd.f32 -1.0, %v971_v25  ;;  %v376_v15 = vrot.slane %v368_v8, %v1607_v32 }
0x1012   :  { %975 = vrot.lane.b32.xlu0 %v1305_v26, %s1544_s0  ;;  %v742_v26 = vsub.s32 3, %v1604_v29 }
0x1084   :  { %v976_v27 = vpop.permute.xlu0 %975 }
0x1085   :  { %v978_v28 = vmul.f32 %v1498_v24, %v976_v27  ;;  %v1242_v27 = vsub.s32 7, %v1604_v29 }
0x1087   :  { %980 = vrot.lane.b32.xlu1 %v978_v28, %s1545_s1 }
0x10f9   :  { %v981_v13 = vpop.permute.xlu1 %980 }
0x10fa   :  { %v983_v30 = vadd.f32 %v981_v13, %v973_v11  ;;  %v1243_v13 = vrot.slane %v38_v4, %v1242_v27 }
0x10fc   :  { %1499 = vtanh.f32 %v983_v30 }
0x1106   :  { %v1500_v31 = vpop.eup %1499 }
0x1107   :  { %986 = vrot.lane.b32.xlu0 %v1500_v31, %s1546_s30  ;;  %v743_v31 = vrot.slane %v38_v4, %v742_v26 }
0x1179   :  { %v987_v35 = vpop.permute.xlu0 %986 }
0x117a   :  { %v1686_v36 = vmul.f32 %v1498_v24, %v987_v35  ;;  %v492_v24 = vsub.s32 1, %v1604_v29  ;;  %v992_v35 = vsub.s32 5, %v1604_v29 }
0x117c   :  { %v1014_v37 = vrot.slane %v1686_v36, %v1607_v32  ;;  %v493_v25 = vrot.slane %v38_v4, %v492_v24  ;;  %v993_v39 = vrot.slane %v38_v4, %v992_v35 }
0x117e   :  { %1015 = vrot.lane.b32.xlu1 %v1014_v37, %s1547_s4  ;;  %v1251_v37 = vrot.slane %v1243_v13, %v1607_v32 }
0x11f0   :  { %v1016_v38 = vpop.permute.xlu1 %1015 }
0x11f1   :  { %1408 = vmatmul.mubr.msk.f32.vlgmr.msra.gmra.mrb[6].mxu1 %vm265_vm4, %v1016_v38  ;;  %v751_v38 = vrot.slane %v743_v31, %v1607_v32 }
0x12c4   :  { %v1085_v41 = vpop.f32.mrb[6].mxu1 }
0x12c5   :  { %v1089_v42 = vadd.f32 %v1085_v41, %v254_v40  ;;  %v1409_v43 = vpop.f32.mrb[7].mxu1  ;;  %v1001_v40 = vrot.slane %v993_v39, %v1607_v32 }
0x12c7   :  { %v1307_v44 = vmul.f32 -1.442695, %v1089_v42 }
0x12c9   :  { %1501 = vpow2.f32 %v1307_v44 }
0x12d3   :  { %v1502_v45 = vpop.eup %1501 }
0x12d4   :  { %v1093_v46 = vadd.f32 1.0, %v1502_v45 }
0x12d6   :  { %1503 = vrcp.f32 %v1093_v46 }
0x12e0   :  { %v1504_v47 = vpop.eup %1503 }
0x12e1   :  { %v1096_v48 = vmul.f32 2.0, %v1504_v47  ;;  %v1098_v33 = vmul.f32 %v1504_v47, %v983_v30  ;;  %v501_v30 = vrot.slane %v493_v25, %v1607_v32 }
0x12e3   :  { %v1308_v49 = vadd.f32 -1.0, %v1096_v48 }
0x12e5   :  { %1100 = vrot.lane.b32.xlu0 %v1308_v49, %s1544_s0 }
0x1357   :  { %v1101_v12 = vpop.permute.xlu0 %1100 }
0x1358   :  { %v1103_v50 = vmul.f32 %v1504_v47, %v1101_v12 }
0x135a   :  { %1105 = vrot.lane.b32.xlu1 %v1103_v50, %s1545_s1 }
0x13cc   :  { %v1106_v52 = vpop.permute.xlu1 %1105 }
0x13cd   :  { %v1108_v53 = vadd.f32 %v1106_v52, %v1098_v33 }
0x13cf   :  { %1505 = vtanh.f32 %v1108_v53 }
0x13d9   :  { %v1506_v55 = vpop.eup %1505 }
0x13da   :  { %1111 = vrot.lane.b32.xlu0 %v1506_v55, %s1546_s30 }
0x144c   :  { %v1112_v56 = vpop.permute.xlu0 %1111 }
0x144d   :  { %v1698_v57 = vmul.f32 %v1504_v47, %v1112_v56 }
0x144f   :  { %v1139_v58 = vrot.slane %v1698_v57, %v1607_v32 }
0x1451   :  { %1140 = vrot.lane.b32.xlu1 %v1139_v58, %s1547_s4 }
0x14c3   :  { %v1141_v59 = vpop.permute.xlu1 %1140 }
0x14c4   :  { %1415 = vmatmul.mubr.msk.f32.vlgmr.msra.gmra.mrb[10].mxu0 %vm265_vm4, %v1141_v59 }
0x1597   :  { %v1210_v61 = vpop.f32.mrb[10].mxu0 }
0x1598   :  { %v1214_v62 = vadd.f32 %v1210_v61, %v256_v60  ;;  %v1416_v63 = vpop.f32.mrb[11].mxu0 }
0x159a   :  { %v1310_v0 = vmul.f32 -1.442695, %v1214_v62 }
0x159c   :  { %1507 = vpow2.f32 %v1310_v0 }
0x15a6   :  { %v1508_v1 = vpop.eup %1507 }
0x15a7   :  { %v1218_v2 = vadd.f32 1.0, %v1508_v1 }
0x15a9   :  { %1509 = vrcp.f32 %v1218_v2 }
0x15b3   :  { %v1705_v5 = vpop.eup %1509 }
0x15b4   :  { %v1221_v6 = vmul.f32 2.0, %v1705_v5  ;;  %v1223_v41 = vmul.f32 %v1705_v5, %v1108_v53 }
0x15b6   :  { %v1311_v10 = vadd.f32 -1.0, %v1221_v6 }
0x15b8   :  { %1225 = vrot.lane.b32.xlu0 %v1311_v10, %s1544_s0 }
0x15bc   :  { %377 = vrot.lane.b32.xlu0 %v376_v15, %s1548_s5 }
0x15c0   :  { %627 = vrot.lane.b32.xlu0 %v626_v18, %s1548_s5 }
0x15c4   :  { %877 = vrot.lane.b32.xlu0 %v876_v21, %s1548_s5 }
0x15c8   :  { %1127 = vrot.lane.b32.xlu0 %v1126_v23, %s1548_s5 }
0x15cc   :  { %1252 = vrot.lane.b32.xlu0 %v1251_v37, %s1548_s5 }
0x162a   :  { %v1226_v28 = vpop.permute.xlu0 %1225 }
0x162b   :  { %v1228_v11 = vmul.f32 %v1705_v5, %v1226_v28 }
0x162d   :  { %1230 = vrot.lane.b32.xlu1 %v1228_v11, %s1545_s1 }
0x162e   :  { %v378_v29 = vpop.permute.xlu0 %377 }
0x162f   :  { %v380_v47 = vmul.f32 %v378_v29, %v1618_v51 }
0x1631   :  { %502 = vrot.lane.b32.xlu1 %v501_v30, %s1548_s5 }
0x1632   :  { %v628_v48 = vpop.permute.xlu0 %627 }
0x1633   :  { %v630_v50 = vmul.f32 %v628_v48, %v1647_v34 }
0x1635   :  { %752 = vrot.lane.b32.xlu1 %v751_v38, %s1548_s5 }
0x1636   :  { %v878_v53 = vpop.permute.xlu0 %877 }
0x1637   :  { %v880_v58 = vmul.f32 %v878_v53, %v1674_v14 }
0x1639   :  { %1002 = vrot.lane.b32.xlu1 %v1001_v40, %s1548_s5 }
0x163a   :  { %v1128_v61 = vpop.permute.xlu0 %1127 }
0x163b   :  { %v1130_v63 = vmul.f32 %v1128_v61, %v1698_v57 }
0x163e   :  { %v1253_v51 = vpop.permute.xlu0 %1252 }
0x169f   :  { %v1231_v42 = vpop.permute.xlu1 %1230 }
0x16a0   :  { %v1233_v43 = vadd.f32 %v1231_v42, %v1223_v41 }
0x16a2   :  { %1511 = vtanh.f32 %v1233_v43 }
0x16a3   :  { %v503_v45 = vpop.permute.xlu1 %502 }
0x16a4   :  { %v505_v46 = vmul.f32 %v503_v45, %v1631_v7 }
0x16a6   :  { %v506_v49 = vadd.f32 %v505_v46, %v380_v47 }
0x16a7   :  { %v753_v12 = vpop.permute.xlu1 %752 }
0x16a8   :  { %v631_v33 = vadd.f32 %v630_v50, %v506_v49  ;;  %v755_v52 = vmul.f32 %v753_v12, %v1660_v54 }
0x16aa   :  { %v756_v55 = vadd.f32 %v755_v52, %v631_v33 }
0x16ab   :  { %v1003_v56 = vpop.permute.xlu1 %1002 }
0x16ac   :  { %v1512_v44 = vpop.eup %1511  ;;  %v881_v59 = vadd.f32 %v880_v58, %v756_v55  ;;  %v1005_v60 = vmul.f32 %v1003_v56, %v1686_v36  ;;  %v1273_v36 = vstv %s1746_s2 }
0x16ad   :  { %1236 = vrot.lane.b32.xlu1 %v1512_v44, %s1546_s30 }
0x16ae   :  { %v1006_v7 = vadd.f32 %v1005_v60, %v881_v59 }
0x16b0   :  { %v1131_v34 = vadd.f32 %v1130_v63, %v1006_v7 }
0x171f   :  { %v1237_v62 = vpop.permute.xlu1 %1236 }
0x1720   :  { %v1239_v0 = vmul.f32 %v1705_v5, %v1237_v62 }
0x1722   :  { %v1255_v1 = vmul.f32 %v1253_v51, %v1239_v0 }
0x1724   :  { %v1256_v2 = vadd.f32 %v1255_v1, %v1131_v34 }
0x1726   :  { %v1264_v54 = vrot.slane %v1256_v2, %v1607_v32 }
0x1728   :  { %1265 = vrot.lane.b32.xlu1 %v1264_v54, %s1547_s4 }
0x179a   :  { %v1266_v14 = vpop.permute.xlu1 %1265 }
0x179b   :  { %v1269_v3 = vsel %vm1268_vm5, %v1266_v14, 0.0 }
0x179c   :  { %1270 = vadd.xlane.f32.xlu0 %v1269_v3 }
0x1829   :  { %v1271_v4 = vpop.xlane.xlu0 %1270 }
0x182a   :  { %v1274_v57 = vadd.f32 %v1273_v36, %v1271_v4 }
0x182c   :  { %1276 = vst.msk [vmem:[%s1747_s3] sm:$0x3] %vm1275_vm6, %v1274_v57 }
0x182d   :  { %1281 = vsyncpa [#allocation4], 1 }

</bundles_post_ra>
